<compile_context>
chip_gen: v5e
topology: v5e:2x2
jax: 0.10.0
libtpu: 0.0.40
codegen_flags: <defaults>
</compile_context>

<pallas_src>
import jax
import jax.numpy as jnp
from jax.experimental import pallas as pl
from jax.experimental.pallas import tpu as pltpu

HIDDEN = 128  # fixed by the module definition


def _round_up(x, m):
    return ((x + m - 1) // m) * m


def _vmem_limit_bytes():
    # v5e/v6e: 128 MiB VMEM per TensorCore; v7x: 64 MiB.  Never request the
    # whole physical VMEM -- leave headroom for compiler scratch/double-buffers.
    try:
        cap = int(pltpu.get_tpu_info().vmem_capacity_bytes)
        return min(64 << 20, (cap * 3) // 4)
    except Exception:
        return 48 << 20  # safe on every generation


def encoder_kernel(x_ref, w1_ref, b1_ref, w2_ref, b2_ref, o_ref, h_acc):
    # x_ref:  (tile_B, tile_K)  matmul dtype (bf16)
    # w1_ref: (tile_K, 128)     matmul dtype
    # b1_ref: (1, 128)          f32
    # w2_ref: (128, N_pad)      matmul dtype (VMEM-resident across grid)
    # b2_ref: (1, N_pad)        f32
    # o_ref:  (tile_B, N_pad)   f32 (lane-dense: N_pad % 128 == 0)
    # h_acc:  (tile_B, 128)     f32 scratch accumulator over the K axis
    k = pl.program_id(1)

    @pl.when(k == 0)
    def _():
        h_acc[...] = jnp.zeros_like(h_acc)

    # First matmul, accumulated over K tiles in f32.
    h_acc[...] += jnp.dot(
        x_ref[...], w1_ref[...], preferred_element_type=jnp.float32
    )

    # Bias + ReLU + second matmul only once, at the last K step (finalize).
    @pl.when(k == pl.num_programs(1) - 1)
    def _():
        h = jnp.maximum(h_acc[...] + b1_ref[...], 0.0)            # f32 VPU work
        y = jnp.dot(
            h.astype(w2_ref.dtype), w2_ref[...],
            preferred_element_type=jnp.float32,
        ) + b2_ref[...]
        o_ref[...] = y.astype(o_ref.dtype)


def encoder_forward(x_nchw, w1, b1, w2, b2, *, use_bf16=True):
    """x_nchw: (B, C, H, W) f32; w1: (input_dim, 128); b1: (128,);
    w2: (128, latent_dim); b2: (latent_dim,).  Returns (B, latent_dim) f32."""
    B = x_nchw.shape[0]
    x_flat = x_nchw.reshape(B, -1)                 # nn.Flatten()
    K = x_flat.shape[1]
    hidden = w1.shape[1]
    latent = w2.shape[1]
    assert hidden == HIDDEN

    mm_dtype = jnp.bfloat16 if use_bf16 else jnp.float32

    # ---- tile sizes / padded shapes ------------------------------------
    tile_K = min(512, _round_up(K, 128))           # K slab (multiple of 128)
    K_pad = _round_up(K, tile_K)
    tile_B = 256 if B >= 256 else _round_up(B, 8)  # batch tile (multiple of 8)
    B_pad = _round_up(B, tile_B)
    N_pad = _round_up(latent, 128)                 # lane-dense output stores

    # ---- pad + cast operands (zero padding does not change the math) ----
    xp = jnp.zeros((B_pad, K_pad), mm_dtype).at[:B, :K].set(
        x_flat.astype(mm_dtype))
    w1p = jnp.zeros((K_pad, hidden), mm_dtype).at[:K, :].set(
        w1.astype(mm_dtype))
    b1p = b1.reshape(1, hidden).astype(jnp.float32)
    w2p = jnp.zeros((hidden, N_pad), mm_dtype).at[:, :latent].set(
        w2.astype(mm_dtype))
    b2p = jnp.zeros((1, N_pad), jnp.float32).at[:, :latent].set(
        b2.reshape(1, latent).astype(jnp.float32))

    grid = (B_pad // tile_B, K_pad // tile_K)

    out = pl.pallas_call(
        encoder_kernel,
        out_shape=jax.ShapeDtypeStruct((B_pad, N_pad), jnp.float32),
        grid_spec=pltpu.PrefetchScalarGridSpec(
            num_scalar_prefetch=0,
            grid=grid,
            in_specs=[
                pl.BlockSpec((tile_B, tile_K), lambda i, k: (i, k)),  # x tile
                pl.BlockSpec((tile_K, hidden), lambda i, k: (k, 0)),  # w1 K-slab
                pl.BlockSpec((1, hidden),      lambda i, k: (0, 0)),  # b1 resident
                pl.BlockSpec((hidden, N_pad),  lambda i, k: (0, 0)),  # w2 resident
                pl.BlockSpec((1, N_pad),       lambda i, k: (0, 0)),  # b2 resident
            ],
            out_specs=pl.BlockSpec((tile_B, N_pad), lambda i, k: (i, 0)),
            scratch_shapes=[pltpu.VMEM((tile_B, hidden), jnp.float32)],
        ),
        compiler_params=pltpu.CompilerParams(
            dimension_semantics=("parallel", "arbitrary"),
            vmem_limit_bytes=_vmem_limit_bytes(),
        ),
    )(xp, w1p, b1p, w2p, b2p)

    return out[:B, :latent]


def init_params(key, input_dim, hidden=HIDDEN, latent_dim=100):
    """Deterministic synthetic init (roughly PyTorch's uniform fan-in scaling).
    Weights stored as (in, out) == PyTorch weight (out, in) transposed."""
    k1, k2, k3, k4 = jax.random.split(key, 4)
    lim1 = 1.0 / jnp.sqrt(input_dim)
    lim2 = 1.0 / jnp.sqrt(hidden)
    w1 = jax.random.uniform(k1, (input_dim, hidden), jnp.float32, -lim1, lim1)
    b1 = jax.random.uniform(k2, (hidden,), jnp.float32, -lim1, lim1)
    w2 = jax.random.uniform(k3, (hidden, latent_dim), jnp.float32, -lim2, lim2)
    b2 = jax.random.uniform(k4, (latent_dim,), jnp.float32, -lim2, lim2)
    return w1, b1, w2, b2


def ref_forward(x_nchw, w1, b1, w2, b2, use_bf16=True):
    """Pure-JAX reference of the same math (matching the bf16 input rounding
    + f32 accumulation that the kernel uses)."""
    B = x_nchw.shape[0]
    xf = x_nchw.reshape(B, -1)
    if use_bf16:
        xf = xf.astype(jnp.bfloat16).astype(jnp.float32)
        w1c = w1.astype(jnp.bfloat16).astype(jnp.float32)
        w2c = w2.astype(jnp.bfloat16).astype(jnp.float32)
    else:
        w1c, w2c = w1, w2
    h = jnp.maximum(xf @ w1c + b1.reshape(1, -1), 0.0)
    if use_bf16:
        h = h.astype(jnp.bfloat16).astype(jnp.float32)
    return h @ w2c + b2.reshape(1, -1)


if __name__ == "__main__":
    key = jax.random.PRNGKey(0)
    kx, kx2, kp = jax.random.split(key, 3)

    # Small example shapes: batch=2, channels=4, spatial=16x16 -> input_dim=1024
    B, C, H, W = 2, 4, 16, 16
    input_dim = C * H * W
    latent_dim = 100

    x = jax.random.normal(kx, (B, C, H, W), jnp.float32)
    w1, b1, w2, b2 = init_params(kp, input_dim, hidden=HIDDEN,
                                 latent_dim=latent_dim)

    # Tiny-batch case (pads B=2 -> 8 rows, latent 100 -> 128 lanes).
    out = encoder_forward(x, w1, b1, w2, b2)
    out = jax.block_until_ready(out)
    ref = ref_forward(x, w1, b1, w2, b2)
    assert out.shape == (B, latent_dim)
    assert jnp.allclose(out, ref, atol=1e-2, rtol=1e-2)

    # Larger batch exercising the batch grid (tile_B=256, padded to 512) and
    # multi-step K pipeline with resident weights.
    B2 = 300
    x2 = jax.random.normal(kx2, (B2, C, H, W), jnp.float32)
    out2 = encoder_forward(x2, w1, b1, w2, b2)
    out2 = jax.block_until_ready(out2)
    ref2 = ref_forward(x2, w1, b1, w2, b2)
    assert out2.shape == (B2, latent_dim)
    assert jnp.allclose(out2, ref2, atol=1e-2, rtol=1e-2)

    print("KERNEL_OK")
</pallas_src>

<mosaic_0001>
module attributes {stable_mosaic.version = 11 : i64} {
  func.func @encoder_kernel(%arg0: i32, %arg1: i32, %arg2: memref<8x512xbf16, #tpu.memory_space<vmem>>, %arg3: memref<512x128xbf16, #tpu.memory_space<vmem>>, %arg4: memref<1x128xf32, #tpu.memory_space<vmem>>, %arg5: memref<128x128xbf16, #tpu.memory_space<vmem>>, %arg6: memref<1x128xf32, #tpu.memory_space<vmem>>, %arg7: memref<8x128xf32, #tpu.memory_space<vmem>>, %arg8: memref<8x128xf32, #tpu.memory_space<vmem>>) attributes {dimension_semantics = [#tpu.dimension_semantics<parallel>, #tpu.dimension_semantics<arbitrary>], iteration_bounds = array<i64: 1, 2>, scalar_prefetch = 0 : i64, scratch_operands = 1 : i64, tpu.core_type = #tpu.core_type<tc>, window_params = [{transform_indices = @transform_0, window_bounds = array<i64: 8, 512>}, {transform_indices = @transform_1, window_bounds = array<i64: 512, 128>}, {pipeline_mode = #tpu.pipeline_mode<synchronous>, transform_indices = @transform_2, window_bounds = array<i64: 1, 128>}, {pipeline_mode = #tpu.pipeline_mode<synchronous>, transform_indices = @transform_3, window_bounds = array<i64: 128, 128>}, {pipeline_mode = #tpu.pipeline_mode<synchronous>, transform_indices = @transform_4, window_bounds = array<i64: 1, 128>}, {transform_indices = @transform_5, window_bounds = array<i64: 8, 128>}]} {
    %c0_i32 = arith.constant 0 : i32
    %0 = arith.cmpi eq, %arg1, %c0_i32 : i32
    %1 = arith.extui %0 : i1 to i32
    %c0_i32_0 = arith.constant 0 : i32
    %2 = arith.cmpi ne, %1, %c0_i32_0 : i32
    scf.if %2 {
      %cst_9 = arith.constant 0.000000e+00 : f32
      %12 = vector.broadcast %cst_9 : f32 to vector<8x128xf32>
      %c0_10 = arith.constant 0 : index
      %c0_11 = arith.constant 0 : index
      %13 = vector.load %arg8[%c0_10, %c0_11] : memref<8x128xf32, #tpu.memory_space<vmem>>, vector<8x128xf32>
      tpu.vector_store %arg8[%c0_10, %c0_11], %12 {strides = array<i32>} : memref<8x128xf32, #tpu.memory_space<vmem>>, vector<8x128xf32>,
    } else {
    }
    %c0 = arith.constant 0 : index
    %c0_1 = arith.constant 0 : index
    %3 = vector.load %arg8[%c0, %c0_1] : memref<8x128xf32, #tpu.memory_space<vmem>>, vector<8x128xf32>
    %c0_2 = arith.constant 0 : index
    %c0_3 = arith.constant 0 : index
    %4 = vector.load %arg2[%c0_2, %c0_3] : memref<8x512xbf16, #tpu.memory_space<vmem>>, vector<8x512xbf16>
    %c0_4 = arith.constant 0 : index
    %c0_5 = arith.constant 0 : index
    %5 = vector.load %arg3[%c0_4, %c0_5] : memref<512x128xbf16, #tpu.memory_space<vmem>>, vector<512x128xbf16>
    %cst = arith.constant dense<0.000000e+00> : vector<8x128xf32>
    %6 = tpu.matmul %4, %5, %cst {dimension_numbers = #tpu.dot_dimension_numbers<[1], [0], [0], [1], [0, 0, 1, 1], [], []>} : vector<8x512xbf16>, vector<512x128xbf16>, vector<8x128xf32> -> vector<8x128xf32>
    %7 = arith.addf %3, %6 : vector<8x128xf32>
    %c0_6 = arith.constant 0 : index
    %c0_7 = arith.constant 0 : index
    %8 = vector.load %arg8[%c0_6, %c0_7] : memref<8x128xf32, #tpu.memory_space<vmem>>, vector<8x128xf32>
    tpu.vector_store %arg8[%c0_6, %c0_7], %7 {strides = array<i32>} : memref<8x128xf32, #tpu.memory_space<vmem>>, vector<8x128xf32>,
    %c1_i32 = arith.constant 1 : i32
    %9 = arith.cmpi eq, %arg1, %c1_i32 : i32
    %10 = arith.extui %9 : i1 to i32
    %c0_i32_8 = arith.constant 0 : i32
    %11 = arith.cmpi ne, %10, %c0_i32_8 : i32
    scf.if %11 {
      %c0_9 = arith.constant 0 : index
      %c0_10 = arith.constant 0 : index
      %12 = vector.load %arg8[%c0_9, %c0_10] : memref<8x128xf32, #tpu.memory_space<vmem>>, vector<8x128xf32>
      %c0_11 = arith.constant 0 : index
      %c0_12 = arith.constant 0 : index
      %13 = vector.load %arg4[%c0_11, %c0_12] : memref<1x128xf32, #tpu.memory_space<vmem>>, vector<1x128xf32>
      %14 = vector.broadcast %13 : vector<1x128xf32> to vector<8x128xf32>
      %15 = arith.addf %12, %14 : vector<8x128xf32>
      %cst_13 = arith.constant 0.000000e+00 : f32
      %16 = vector.broadcast %cst_13 : f32 to vector<8x128xf32>
      %17 = arith.maximumf %15, %16 : vector<8x128xf32>
      %18 = arith.truncf %17 : vector<8x128xf32> to vector<8x128xbf16>
      %c0_14 = arith.constant 0 : index
      %c0_15 = arith.constant 0 : index
      %19 = vector.load %arg5[%c0_14, %c0_15] : memref<128x128xbf16, #tpu.memory_space<vmem>>, vector<128x128xbf16>
      %cst_16 = arith.constant dense<0.000000e+00> : vector<8x128xf32>
      %20 = tpu.matmul %18, %19, %cst_16 {dimension_numbers = #tpu.dot_dimension_numbers<[1], [0], [0], [1], [0, 0, 1, 1], [], []>} : vector<8x128xbf16>, vector<128x128xbf16>, vector<8x128xf32> -> vector<8x128xf32>
      %c0_17 = arith.constant 0 : index
      %c0_18 = arith.constant 0 : index
      %21 = vector.load %arg6[%c0_17, %c0_18] : memref<1x128xf32, #tpu.memory_space<vmem>>, vector<1x128xf32>
      %22 = vector.broadcast %21 : vector<1x128xf32> to vector<8x128xf32>
      %23 = arith.addf %20, %22 : vector<8x128xf32>
      %c0_19 = arith.constant 0 : index
      %c0_20 = arith.constant 0 : index
      %24 = vector.load %arg7[%c0_19, %c0_20] : memref<8x128xf32, #tpu.memory_space<vmem>>, vector<8x128xf32>
      tpu.vector_store %arg7[%c0_19, %c0_20], %23 {strides = array<i32>} : memref<8x128xf32, #tpu.memory_space<vmem>>, vector<8x128xf32>,
    } else {
    }
    return
  }
  func.func @transform_0(%arg0: i32, %arg1: i32) -> (i32, i32) {
    %c0_i32 = arith.constant 0 : i32
    return %arg0, %arg1 : i32, i32
  }
  func.func @transform_1(%arg0: i32, %arg1: i32) -> (i32, i32) {
    %c0_i32 = arith.constant 0 : i32
    %c0_i32_0 = arith.constant 0 : i32
    return %arg1, %c0_i32 : i32, i32
  }
  func.func @transform_2(%arg0: i32, %arg1: i32) -> (i32, i32) {
    %c0_i32 = arith.constant 0 : i32
    %c0_i32_0 = arith.constant 0 : i32
    %c0_i32_1 = arith.constant 0 : i32
    return %c0_i32, %c0_i32_0 : i32, i32
  }
  func.func @transform_3(%arg0: i32, %arg1: i32) -> (i32, i32) {
    %c0_i32 = arith.constant 0 : i32
    %c0_i32_0 = arith.constant 0 : i32
    %c0_i32_1 = arith.constant 0 : i32
    return %c0_i32, %c0_i32_0 : i32, i32
  }
  func.func @transform_4(%arg0: i32, %arg1: i32) -> (i32, i32) {
    %c0_i32 = arith.constant 0 : i32
    %c0_i32_0 = arith.constant 0 : i32
    %c0_i32_1 = arith.constant 0 : i32
    return %c0_i32, %c0_i32_0 : i32, i32
  }
  func.func @transform_5(%arg0: i32, %arg1: i32) -> (i32, i32) {
    %c0_i32 = arith.constant 0 : i32
    %c0_i32_0 = arith.constant 0 : i32
    return %arg0, %c0_i32 : i32, i32
  }
}

</mosaic_0001>

<bundles_post_ra>
// kernel: tpu_custom_call.1
= control target key start
LH: loop header
LB: loop body
LE: loop exit
PB: predicated region body
PF: predicated region fallthrough
CT: control target
= control target key end

     0   :  { %s1543_s0 = inlined_call_operand.hbm [shape: bf16[8,1024], index: 0, kind: input, shape index: {}]   ;;  %s1544_s1 = inlined_call_operand.hbm [shape: bf16[1024,128], index: 1, kind: input, shape index: {}]   ;;  %s1545_s2 = inlined_call_operand.vmem [shape: f32[1,128], index: 2, kind: input, shape index: {}]   ;;  %s1546_s3 = inlined_call_operand.hbm [shape: bf16[128,128], index: 3, kind: input, shape index: {}]   ;;  %s1547_s4 = inlined_call_operand.vmem [shape: f32[1,128], index: 4, kind: input, shape index: {}]   ;;  %s1548_s5 = inlined_call_operand.hbm [shape: f32[8,128], index: 5, kind: output, shape index: {}]  }
   0x1   :  { %1552 = sst [smem:[#allocation16_spill]] %s1546_s3 }
   0x2   :  { %10 = vsyncpa [#allocation4], 0 }
   0x3   :  { %12 = vsyncpa [#allocation4 + $0x1], 0 }
   0x4   :  { %13 = vsyncpa [#allocation7], 0 }
   0x5   :  { %15 = vsyncpa [#allocation7 + $0x1], 0 }
   0x6   :  { %16 = vsyncpa [#allocation5], 0  ;;  %s1367_s18 = smov 0   ;;  %s1369_s19 = smov 0  }
   0x7   :  { %s1371_s20 = smov 0   ;;  %s1373_s21 = smov 0  }
   0x8   :  { %s1375_s22 = smov 0   ;;  %s1377_s23 = smov 0  }
   0x9 LB: > { %s1398_s24 = sadd.s32 4294967295, %s1330_s23   ;;  %p846_p0 = scmp.ge.s32.totalorder %s1330_s23, 1  ;;  %s1330_s23 = sphi %s1377_s23, %s22_s23   ;;  %s1326_s22 = sphi %s1375_s22, %s1567_s22   ;;  %s1322_s21 = sphi %s1373_s21, %s1566_s21   ;;  %s1318_s20 = sphi %s1371_s20, %s1565_s20   ;;  %s1314_s19 = sphi %s1369_s19, %s1564_s19   ;;  %s1310_s18 = sphi %s1367_s18, %s1563_s18  }
   0xa   : > { %p57_p1 = scmp.eq.s32.totalorder %s1398_s24, 0  ;;  %p182_p2 = scmp.lt.s32.totalorder %s1330_s23, 3 }
   0xb   : > { %s1553_s3 = sld [smem:[#allocation16_spill]]  ;;  %s1332_s29 = smov [#allocation8]  }
   0xc   : > { %p1406_p3 = pnand %p846_p0, %p182_p2  ;;  %s198_s30 = sshll.u32 %s1332_s29, 4  ;;  %s199_s30 = int_to_ptr.vmem [resolvable:$true] %s198_s30 }
   0xd   : > { %s1549_s6 = smov 64   ;;  %s1550_s7 = smov 4  }
   0xe   : > { %p1079_p4 = pneg %p1406_p3  ;;  %s31_s8 = sadd.s32 1, %s1326_s22 }
   0xf   : > { %p32_p6 = scmp.ge.s32.totalorder %s31_s8, 2  ;;  %s43_s9 = sadd.s32 1, %s1318_s20 }
  0x10   : > { %p1080_p5 = pnand %p1079_p4, %p57_p1  ;;  %p50_p7 = scmp.ne.s32.totalorder %s1318_s20, %s1314_s19 }
  0x11   : > { %s196_s27 = sshll.u32 %s1553_s3, 4  ;;  %p51_p8 = scmp.eq.s32.totalorder %s1330_s23, 0  ;;  %s197_s27 = int_to_ptr.hbm [resolvable:$true] %s196_s27 }
  0x12   : > { %1082 = dma.hbm_to_vmem [thread:$0]  (!%p1080_p5), %s197_s27, 1024, %s199_s30, [#allocation7], %s1549_s6, %s1549_s6, %s1550_s7  }
  0x13   : > { %s1569_s8 = smov (%p32_p6, %s31_s8), 0  ;;  %p1424_p9 = por %p51_p8, %p50_p7 }
  0x14   : > { %1555 = sst [smem:[#allocation14_spill]] %s1569_s8  ;;  %p56_p10 = scmp.ne.s32.totalorder %s1314_s19, %s1310_s18 }
  0x15   : > { %s39_s11 = ssub.s32 %s1326_s22, %s1569_s8  ;;  %p1091_p11 = scmp.lt.s32.totalorder %s1330_s23, 2 }
  0x16   : > { %p41_p12 = scmp.eq.s32.totalorder %s39_s11, 0  ;;  %p1435_p13 = por %p57_p1, %p56_p10 }
  0x17   : > { %s215_s13 = sand.u32 1, %s1318_s20   ;;  %s1025_s14 = sshll.u32 %s1326_s22, 4 }
  0x18   : > { %s1442_s15 = scalar_select %p41_p12, %s1318_s20, %s43_s9  }
  0x19   : > { %s849_s16 = sshll.u32 %s215_s13, 4  ;;  %s226_s26 = scalar_lea.hbm %s1543_s0, %s1025_s14 }
  0x1a   : > { %1558 = sst [smem:[#allocation15_spill]] %s1442_s15  ;;  %s228_s18 = sshll.u32 %s226_s26, 4  ;;  %s229_s18 = int_to_ptr.hbm [resolvable:$true] %s228_s18 }
  0x1b   : > { %s219_s27 = scalar_lea.vmem [#allocation3], %s849_s16  ;;  %p1084_p0 = pnand %p1091_p11, %p1424_p9 }
  0x1c   : > { %s230_s29 = sshll.u32 %s219_s27, 4  ;;  %s852_s30 = sshll.u32 %s215_s13, 8  ;;  %s231_s29 = int_to_ptr.vmem [resolvable:$true] %s230_s29 }
  0x1d   : > { %s1026_s11 = sshll.u32 %s1326_s22, 8  ;;  %s241_s6 = scalar_lea.vmem [#allocation6], %s852_s30 }
  0x1e   : > { %s249_s7 = sshll.u32 %s241_s6, 4  ;;  %s216_s9 = scalar_lea.sflag [#allocation4], %s215_s13  ;;  %s250_s7 = int_to_ptr.vmem [resolvable:$true] %s249_s7 }
  0x1f   : > { %1086 = dma.hbm_to_vmem [thread:$0]  (!%p1084_p0), %s229_s18, 256, %s231_s29, %s216_s9  }
  0x20   : > { %s237_s3 = sand.u32 1, %s1330_s23   ;;  %s246_s14 = scalar_lea.hbm %s1544_s1, %s1026_s11 }
  0x21   : > { %s247_s17 = sshll.u32 %s246_s14, 4  ;;  %s238_s16 = scalar_lea.sflag [#allocation7], %s237_s3  ;;  %s248_s17 = int_to_ptr.hbm [resolvable:$true] %s247_s17 }
  0x22   : > { %s1559_s25 = smov 4   ;;  %s1560_s26 = smov 64  }
  0x23   : > { %1089 = dma.hbm_to_vmem [thread:$0]  (!%p1084_p0), %s248_s17, 4096, %s250_s7, %s238_s16, %s1560_s26, %s1560_s26, %s1559_s25  }
  0x24   : > { %261 = sbr.rel (%p1406_p3) target bundleno = 403 (0x193), region = 40  ;;  %s263_s6 = sand.u32 (!%p1406_p3), 1, %s1314_s19  }
  0x25   : > { %s856_s10 = sshll.u32 (!%p1406_p3), %s263_s6, 4  ;;  %s264_s13 = scalar_lea.sflag (!%p1406_p3), [#allocation4], %s263_s6 }
  0x26   : > { %s1462_s18 = scalar_lea.vmem (!%p1406_p3), [#allocation3], %s856_s10 }
  0x29   : > { %1293 = dma.done.wait (%p1435_p13), %s264_s13, 256  }
  0x2a   : > { %1295 = vsyncadd (%p1435_p13), %s264_s13, 4294967040  ;;  %s273_s3 = sand.u32 1, %s1398_s24   ;;  %s857_s8 = sshll.u32 %s263_s6, 8 }
  0x2b   : > { %s274_s7 = scalar_lea.sflag [#allocation7], %s273_s3  ;;  %s1469_s15 = scalar_lea.vmem [#allocation6], %s857_s8 }
  0x2c   : > { %1297 = dma.done.wait (%p1435_p13), %s274_s7, 4096  }
  0x2d   : > { %1299 = vsyncadd (%p1435_p13), %s274_s7, 4294963200 }
  0x2e   : > { %1301 = dma.done.wait (%p57_p1), [#allocation7], 1024  }
  0x2f   : > { %1303 = vsyncadd (%p57_p1), [#allocation7], 4294966272  ;;  %p859_p2 = scmp.ne.s32.totalorder %s1322_s21, 0 }
  0x31   : > { %315 = sbr.rel (%p859_p2) target bundleno = 56 (0x38), region = 56 }
  0x36   : > { %v1335_v0 = vmov 0.0  }
  0x37   : > { %316 = vst [vmem:[#allocation2] sm:$0xff] %v1335_v0 }
  0x38 PF: > { %v1034_v1 = vld [vmem:[%s1469_s15 + $0x38] sm:$0xff]  ;;  %v1033_v5 = vld [vmem:[%s1469_s15 + $0x30] sm:$0xff]  ;;  %v1032_v9 = vld [vmem:[%s1469_s15 + $0x28] sm:$0xff]  ;;  %p988_p1 = scmp.ne.s32.totalorder %s1322_s21, 1 }
  0x39   : > { %v1042_v2 = vld [vmem:[%s1469_s15 + $0x78] sm:$0xff]  ;;  %590 = vmatpush.bf16.msra.mxu0 %v1034_v1  ;;  %v1041_v6 = vld [vmem:[%s1469_s15 + $0x70] sm:$0xff]  ;;  %v1040_v10 = vld [vmem:[%s1469_s15 + $0x68] sm:$0xff] }
  0x3a   : > { %v1050_v3 = vld [vmem:[%s1469_s15 + $0xb8] sm:$0xff]  ;;  %603 = vmatpush.bf16.msra.mxu1 %v1042_v2  ;;  %v1049_v7 = vld [vmem:[%s1469_s15 + $0xb0] sm:$0xff]  ;;  %v1048_v11 = vld [vmem:[%s1469_s15 + $0xa8] sm:$0xff] }
  0x3b   : > { %v1058_v4 = vld [vmem:[%s1469_s15 + $0xf8] sm:$0xff]  ;;  %616 = vmatpush.bf16.msra.mxu2 %v1050_v3  ;;  %v1057_v8 = vld [vmem:[%s1469_s15 + $0xf0] sm:$0xff]  ;;  %v1056_v12 = vld [vmem:[%s1469_s15 + $0xe8] sm:$0xff] }
  0x3c   : > { %629 = vmatpush.bf16.msra.mxu3 %v1058_v4  ;;  %v1031_v13 = vld [vmem:[%s1469_s15 + $0x20] sm:$0xff]  ;;  %v1030_v17 = vld [vmem:[%s1469_s15 + $0x18] sm:$0xff]  ;;  %v1029_v21 = vld [vmem:[%s1469_s15 + $0x10] sm:$0xff] }
  0x3d   : > { %591 = vmatpush.bf16.msra.mxu0 %v1033_v5  ;;  %v1039_v14 = vld [vmem:[%s1469_s15 + $0x60] sm:$0xff]  ;;  %v1038_v18 = vld [vmem:[%s1469_s15 + $0x58] sm:$0xff]  ;;  %v1037_v22 = vld [vmem:[%s1469_s15 + $0x50] sm:$0xff] }
  0x3e   : > { %604 = vmatpush.bf16.msra.mxu1 %v1041_v6  ;;  %v1047_v15 = vld [vmem:[%s1469_s15 + $0xa0] sm:$0xff]  ;;  %v1046_v19 = vld [vmem:[%s1469_s15 + $0x98] sm:$0xff]  ;;  %v1045_v23 = vld [vmem:[%s1469_s15 + $0x90] sm:$0xff] }
  0x3f   : > { %617 = vmatpush.bf16.msra.mxu2 %v1049_v7  ;;  %v1055_v16 = vld [vmem:[%s1469_s15 + $0xe0] sm:$0xff]  ;;  %v1054_v20 = vld [vmem:[%s1469_s15 + $0xd8] sm:$0xff]  ;;  %v1053_v24 = vld [vmem:[%s1469_s15 + $0xd0] sm:$0xff] }
  0x40   : > { %630 = vmatpush.bf16.msra.mxu3 %v1057_v8  ;;  %v1028_v25 = vld [vmem:[%s1469_s15 + $0x8] sm:$0xff]  ;;  %v318_v27 = vld [vmem:[%s1462_s18] sm:$0xff]  ;;  %v317_v51 = vld [vmem:[#allocation2] sm:$0xff] }
  0x41   : > { %592 = vmatpush.bf16.msra.mxu0 %v1032_v9  ;;  %v1036_v26 = vld [vmem:[%s1469_s15 + $0x48] sm:$0xff]  ;;  %v386_v31 = vunpack.c.l.b16 %v318_v27  ;;  %v387_v32 = vunpack.c.h.b16 %v318_v27  ;;  %v1027_v33 = vld [vmem:[%s1469_s15] sm:$0xff] }
  0x42   : > { %605 = vmatpush.bf16.msra.mxu1 %v1040_v10  ;;  %v1044_v28 = vld [vmem:[%s1469_s15 + $0x88] sm:$0xff]  ;;  %v1035_v34 = vld [vmem:[%s1469_s15 + $0x40] sm:$0xff] }
  0x43   : > { %618 = vmatpush.bf16.msra.mxu2 %v1048_v11  ;;  %v1052_v29 = vld [vmem:[%s1469_s15 + $0xc8] sm:$0xff]  ;;  %v1043_v37 = vld [vmem:[%s1469_s15 + $0x80] sm:$0xff]  ;;  %v390_v39 = vpack.c.b16 %v386_v31, %v386_v31  ;;  %v391_v40 = vpack.c.b16 %v387_v32, %v387_v32 }
  0x44   : > { %631 = vmatpush.bf16.msra.mxu3 %v1056_v12  ;;  %v319_v30 = vld [vmem:[%s1462_s18 + $0x8] sm:$0xff]  ;;  %v1051_v38 = vld [vmem:[%s1469_s15 + $0xc0] sm:$0xff] }
  0x45   : > { %593 = vmatpush.bf16.msra.mxu0 %v1031_v13  ;;  %v388_v35 = vunpack.c.l.b16 %v319_v30  ;;  %v389_v36 = vunpack.c.h.b16 %v319_v30 }
  0x46   : > { %606 = vmatpush.bf16.msra.mxu1 %v1039_v14 }
  0x47   : > { %619 = vmatpush.bf16.msra.mxu2 %v1047_v15  ;;  %v392_v41 = vpack.c.b16 %v388_v35, %v388_v35  ;;  %v393_v42 = vpack.c.b16 %v389_v36, %v389_v36 }
  0x48   : > { %632 = vmatpush.bf16.msra.mxu3 %v1055_v16 }
  0x49   : > { %594 = vmatpush.bf16.msra.mxu0 %v1030_v17 }
  0x4a   : > { %607 = vmatpush.bf16.msra.mxu1 %v1038_v18 }
  0x4b   : > { %620 = vmatpush.bf16.msra.mxu2 %v1046_v19 }
  0x4c   : > { %633 = vmatpush.bf16.msra.mxu3 %v1054_v20 }
  0x4d   : > { %595 = vmatpush.bf16.msra.mxu0 %v1029_v21 }
  0x4e   : > { %608 = vmatpush.bf16.msra.mxu1 %v1037_v22 }
  0x4f   : > { %621 = vmatpush.bf16.msra.mxu2 %v1045_v23 }
  0x50   : > { %634 = vmatpush.bf16.msra.mxu3 %v1053_v24 }
  0x51   : > { %596 = vmatpush.bf16.msra.mxu0 %v1028_v25 }
  0x52   : > { %609 = vmatpush.bf16.msra.mxu1 %v1036_v26 }
  0x53   : > { %622 = vmatpush.bf16.msra.mxu2 %v1044_v28 }
  0x54   : > { %635 = vmatpush.bf16.msra.mxu3 %v1052_v29 }
  0x55   : > { %597 = vmatpush.bf16.msra.mxu0 %v1027_v33 }
  0x56   : > { %610 = vmatpush.bf16.msra.mxu1 %v1035_v34 }
  0x57   : > { %623 = vmatpush.bf16.msra.mxu2 %v1043_v37 }
  0x58   : > { %636 = vmatpush.bf16.msra.mxu3 %v1051_v38  ;;  %598 = vmatmul.bf16.vlgmr.msra.gmra.mxu0 %v390_v39 }
  0x59   : > { %611 = vmatmul.bf16.vlgmr.msra.gmra.mxu1 %v391_v40 }
  0x5a   : > { %624 = vmatmul.bf16.vlgmr.msra.gmra.mxu2 %v392_v41 }
  0x5b   : > { %637 = vmatmul.bf16.vlgmr.msra.gmra.mxu3 %v393_v42 }
  0xd5   : > { %v599_v43 = vpop.f32.mrf.mxu0 }
  0xd6   : > { %v612_v44 = vpop.f32.mrf.mxu1 }
  0xd7   : > { %v613_v45 = vadd.f32 %v612_v44, %v599_v43 }
  0xdd   : > { %v625_v46 = vpop.f32.mrf.mxu2  ;;  %v601_v49 = vpop.f32.mrf.mxu0 }
  0xde   : > { %v638_v47 = vpop.f32.mrf.mxu3  ;;  %v626_v48 = vadd.f32 %v625_v46, %v613_v45  ;;  %v614_v50 = vpop.f32.mrf.mxu1 }
  0xe0   : > { %v639_v52 = vadd.f32 %v638_v47, %v626_v48 }
  0xe2   : > { %v642_v53 = vadd.f32 %v639_v52, %v317_v51  ;;  %647 = sbr.rel (%p988_p1) target bundleno = 397 (0x18d), region = 60 }
  0xe4   : > { %643 = vst [vmem:[#allocation2] sm:$0xff] %v642_v53 }
  0xe5   : > { %v627_v54 = vpop.f32.mrf.mxu2 }
  0xe6   : > { %v640_v55 = vpop.f32.mrf.mxu3 }
  0xe7   : > { %v1066_v56 = vld [vmem:[#allocation8 + $0x38] sm:$0xff]  ;;  %v1065_v57 = vld [vmem:[#allocation8 + $0x30] sm:$0xff]  ;;  %v1064_v58 = vld [vmem:[#allocation8 + $0x28] sm:$0xff] }
  0xe8   : > { %724 = vmatpush.bf16.msra.mxu0 %v1066_v56  ;;  %v1063_v59 = vld [vmem:[#allocation8 + $0x20] sm:$0xff]  ;;  %v1062_v60 = vld [vmem:[#allocation8 + $0x18] sm:$0xff]  ;;  %v1061_v62 = vld [vmem:[#allocation8 + $0x10] sm:$0xff] }
  0xe9   : > { %v1148_v61 = vld [vmem:[%s1545_s2] ss:$0 sm:$0xff]  ;;  %v1060_v1 = vld [vmem:[#allocation8 + $0x8] sm:$0xff]  ;;  %v1059_v3 = vld [vmem:[#allocation8] sm:$0xff] }
  0xea   : > { %v1149_v5 = vld [vmem:[%s1547_s4] ss:$0 sm:$0xff] }
  0xeb   : > { %v648_v63 = vld [vmem:[#allocation2] sm:$0xff] }
  0xec   : > { %725 = vmatpush.bf16.msra.mxu0 %v1065_v57  ;;  %v653_v0 = vadd.f32 %v1148_v61, %v648_v63 }
  0xee   : > { %v654_v2 = vmax.f32 %v653_v0, 0.0 }
  0xf0   : > { %726 = vmatpush.bf16.msra.mxu0 %v1064_v58  ;;  %v655_v4 = vpack.c.bf16 %v654_v2, %v654_v2 }
  0xf4   : > { %727 = vmatpush.bf16.msra.mxu0 %v1063_v59 }
  0xf8   : > { %728 = vmatpush.bf16.msra.mxu0 %v1062_v60 }
  0xfc   : > { %729 = vmatpush.bf16.msra.mxu0 %v1061_v62 }
 0x100   : > { %730 = vmatpush.bf16.msra.mxu0 %v1060_v1 }
 0x104   : > { %731 = vmatpush.bf16.msra.mxu0 %v1059_v3 }
 0x107   : > { %732 = vmatmul.bf16.vlgmr.msra.gmra.mxu0 %v655_v4 }
 0x184   : > { %v733_v6 = vpop.f32.mrf.mxu0 }
 0x185   : > { %v734_v7 = vadd.f32 %v1149_v5, %v733_v6 }
 0x187   : > { %737 = vst [vmem:[#allocation9] sm:$0xff] %v734_v7 }
 0x18c   : > { %v735_v8 = vpop.f32.mrf.mxu0 }
 0x18d PF: > { %p1093_p3 = scmp.eq.s32.totalorder %s1398_s24, 1  ;;  %s748_s11 = sshll.u32 %s1548_s5, 4  ;;  %s749_s11 = int_to_ptr.hbm [resolvable:$true] %s748_s11 }
 0x18e   : > { %s1336_s9 = smov [#allocation9]  }
 0x18f   : > { %s746_s14 = sshll.u32 %s1336_s9, 4  ;;  %s747_s14 = int_to_ptr.vmem [resolvable:$true] %s746_s14 }
 0x190   : > { %1076 = dma.vmem_to_hbm [thread:$0]  (%p1093_p3), %s747_s14, 128, %s749_s11, [#allocation5]  }
 0x191   : > { %1305 = dma.done.wait (%p1093_p3), [#allocation5], 128  }
 0x192   : > { %1307 = vsyncadd (%p1093_p3), [#allocation5], 4294967168 }
 0x193 PF: > { %s22_s23 = sadd.s32 1, %s1330_s23   ;;  %s1561_s17 = sld [smem:[#allocation15_spill]] }
 0x194   : > { %p19_p4 = scmp.ge.s32.totalorder %s22_s23, 4   ;;  %s1562_s24 = sld [smem:[#allocation14_spill]] }
 0x195   : > { %s1563_s18 = smov %s1314_s19  ;;  %s1564_s19 = smov %s1318_s20 }
 0x196   : > { %s1566_s21 = smov %s1326_s22  ;;  %21 = sbr.rel (!%p19_p4) target bundleno = 9 (0x9), region = 103 }
 0x199   : > { %s1565_s20 = smov %s1561_s17 }
 0x19a   : > { %s1567_s22 = smov %s1562_s24 }
 0x19b   :  { %762 = vsyncpa [#allocation4], 1 }
 0x19c   :  { %764 = vsyncpa [#allocation4 + $0x1], 1 }
 0x19d   :  { %765 = vsyncpa [#allocation7], 1 }
 0x19e   :  { %767 = vsyncpa [#allocation7 + $0x1], 1 }
 0x19f   :  { %768 = vsyncpa [#allocation5], 1 }
 0x1a0   :  { %770 = vsyncpa [#allocation5 + $0x1], 1 }

</bundles_post_ra>
